<compile_context>
chip_gen: v5e
topology: v5e:2x2
jax: 0.10.0
libtpu: 0.0.40
codegen_flags: <defaults>
</compile_context>

<pallas_src>
import jax
import jax.numpy as jnp
from jax import lax
from jax.experimental import pallas as pl
from jax.experimental.pallas import tpu as pltpu

_ROW_ALIGN = 32           # sublane alignment covering int8 (32) and int32 (8)
_SMALL_ELEMS = 1 << 20    # below ~1M mask elements the fused-jnp path wins


def _round_up(x, m):
    return ((x + m - 1) // m) * m


def _phrase_masks_kernel(span_ref, out_ref):
    """span_ref: (TM, 2) int32 — per-row [start, length] with length >= 0.
    out_ref: (TM, L) mask tile; row r is 1 on [start_r, start_r + length_r)."""
    tm, lanes = out_ref.shape
    start = span_ref[:, 0:1]                                # (TM, 1)
    length = span_ref[:, 1:2]                               # (TM, 1), >= 0
    j = lax.broadcasted_iota(jnp.int32, (tm, lanes), 1)     # token index (>=2D iota)
    # Single unsigned range check: (j - start) wraps to a huge uint32 when
    # j < start, so one compare replaces (j >= start) & (j < end).
    rel = pltpu.bitcast(j - start, jnp.uint32)
    len_u = pltpu.bitcast(length, jnp.uint32)
    out_ref[...] = (rel < len_u).astype(out_ref.dtype)


def _out_buffer_budget_bytes():
    # Generation-gated tile budget: v5e/v6e have 128 MiB physical VMEM ->
    # 16 MiB per output buffer; v7x has 64 MiB -> stay at 8 MiB so the
    # double-buffered output fits comfortably under its scoped limit.
    try:
        vmem = getattr(pltpu.get_tpu_info(), "vmem_capacity_bytes", 0)
        return (16 << 20) if vmem >= (100 << 20) else (8 << 20)
    except Exception:
        return 8 << 20


def _pick_tile_rows(ngroups, l, elem_bytes, tile_rows, budget_bytes):
    if tile_rows is not None:
        return max(_ROW_ALIGN, _round_up(int(tile_rows), _ROW_ALIGN))
    # Pure bytes-based cap (no fixed row cap): keep each step's writeback much
    # larger than the ~0.35 us per-grid-step overhead.
    by_vmem = max(_ROW_ALIGN, budget_bytes // max(1, l * elem_bytes))
    tm = min(by_vmem, _round_up(ngroups, _ROW_ALIGN))
    return max(_ROW_ALIGN, (tm // _ROW_ALIGN) * _ROW_ALIGN)


def phrase_groups(x, distinct, scaling=1.5, *, key, mask_dtype=jnp.int8,
                  force_pallas=False, tile_rows=None):
    """Pallas implementation of PhraseGroups.forward.

    Returns (masks, perm): masks is an (ngroups, L) 0/1 array (row k = k-th
    selected phrase mask); perm is the selected base-mask indices.
    """
    L, D = x.shape
    n_masks = len(range(0, L, 3))
    max_groups = int(scaling * distinct)
    ngroups = min(max_groups, n_masks)

    if ngroups <= 0:
        # Degenerate: nothing to emit (empty input or distinct == 0).
        return jnp.zeros((0, L), mask_dtype), jnp.zeros((0,), jnp.int32)

    # torch.randperm(len(masks))[:ngroups] equivalent (RNG is glue, not hot path).
    perm = jax.random.permutation(key, n_masks)[:ngroups].astype(jnp.int32)

    # Per-row half-open span [start, end): hoisted out of the kernel.
    start = 3 * perm
    tail_end = min(D, L)  # faithful to mask[word_i:len(x[0])] in the module
    end = jnp.where(L - start >= 3, start + 3, tail_end).astype(jnp.int32)
    # Clamp to >= 0 so the in-kernel unsigned range check is correct in the
    # D < L tail case where end < start (row stays all zeros, like the torch slice).
    length = jnp.maximum(end - start, 0).astype(jnp.int32)

    if not force_pallas and ngroups * L < _SMALL_ELEMS:
        # Small problem: pallas_call dispatch dominates — let XLA fuse it.
        j = jnp.arange(L, dtype=jnp.int32)[None, :]
        masks = ((j >= start[:, None]) & (j < end[:, None])).astype(mask_dtype)
        return masks, perm

    elem_bytes = jnp.dtype(mask_dtype).itemsize
    budget = _out_buffer_budget_bytes()
    tm = _pick_tile_rows(ngroups, L, elem_bytes, tile_rows, budget)

    # One packed (ngroups, 2) [start, length] operand: one input DMA per step.
    spans = jnp.stack([start, length], axis=1)

    # Output shape is exactly (ngroups, L): full-extent lane dim + cdiv grid
    # with a boundary-masked last row block.  No lane padding, no row padding,
    # no post-kernel slice (no extra HBM read+write pass).
    masks = pl.pallas_call(
        _phrase_masks_kernel,
        out_shape=jax.ShapeDtypeStruct((ngroups, L), mask_dtype),
        grid=(pl.cdiv(ngroups, tm),),
        in_specs=[pl.BlockSpec((tm, 2), lambda i: (i, 0))],
        out_specs=pl.BlockSpec((tm, L), lambda i: (i, 0)),
        compiler_params=pltpu.CompilerParams(
            # TODO(synk): verify with a trace that the row-tile axis shards
            # across v7x's two TensorCores; if not, switch to CORE_PARALLEL.
            dimension_semantics=("parallel",),
            vmem_limit_bytes=2 * budget + (4 << 20)),
    )(spans)

    # TODO(synk): PyTorch emits int64 (.long()) masks as a Python list of rows;
    # here a single (ngroups, L) int8 array with identical 0/1 values.
    return masks, perm


def _reference(L, D, distinct, scaling, perm):
    """Pure-Python replica of the PyTorch forward, using the same perm."""
    base_masks = []
    for word_i in range(0, L, 3):
        m = [0] * L
        diff = L - word_i
        if diff >= 3:
            for j in range(word_i, word_i + 3):
                m[j] = 1
        else:
            for j in range(word_i, min(D, L)):
                m[j] = 1
        base_masks.append(m)
    max_groups = int(scaling * distinct)
    ngroups = min(max_groups, len(base_masks))
    sel = [base_masks[int(p)] for p in perm[:ngroups]]
    return jnp.array(sel, dtype=jnp.int32)


if __name__ == "__main__":
    key = jax.random.PRNGKey(0)
    kx, kp1, kp2 = jax.random.split(key, 3)

    # Case 1: tiny demo shape implied by the module (seq_len=8 tokens, hidden=32).
    L, D = 8, 32
    x = jax.random.normal(kx, (L, D), dtype=jnp.float32)
    distinct, scaling = 2, 1.5

    masks, perm = phrase_groups(x, distinct, scaling, key=kp1, force_pallas=True)
    masks = jax.block_until_ready(masks)
    ref = _reference(L, D, distinct, scaling, jax.device_get(perm))
    assert masks.shape == ref.shape, (masks.shape, ref.shape)
    assert bool(jnp.all(masks.astype(jnp.int32) == ref)), "Pallas mismatch (small)"

    # Auto path at this size takes the fused-jnp route; same key -> same perm.
    masks_jnp, _ = phrase_groups(x, distinct, scaling, key=kp1)
    assert bool(jnp.all(masks_jnp.astype(jnp.int32) == ref)), "jnp path mismatch"

    # Case 2: exercise multi-tile grid, the boundary-masked last row block,
    # the non-128-multiple lane extent, and the D < L tail-truncation branch.
    L2, D2 = 301, 64
    x2 = jax.random.normal(kx, (L2, D2), dtype=jnp.float32)
    masks2, perm2 = phrase_groups(x2, 80, 1.5, key=kp2,
                                  force_pallas=True, tile_rows=32)
    masks2 = jax.block_until_ready(masks2)
    ref2 = _reference(L2, D2, 80, 1.5, jax.device_get(perm2))
    assert masks2.shape == ref2.shape, (masks2.shape, ref2.shape)
    assert bool(jnp.all(masks2.astype(jnp.int32) == ref2)), "Pallas mismatch (tiled)"

    print("KERNEL_OK")
</pallas_src>

<mosaic_0001>
module attributes {stable_mosaic.version = 11 : i64} {
  func.func @_phrase_masks_kernel(%arg0: i32, %arg1: memref<32x2xi32, #tpu.memory_space<vmem>>, %arg2: memref<32x8xi8, #tpu.memory_space<vmem>>) attributes {dimension_semantics = [#tpu.dimension_semantics<parallel>], iteration_bounds = array<i64: 1>, scalar_prefetch = 0 : i64, scratch_operands = 0 : i64, tpu.core_type = #tpu.core_type<tc>, window_params = [{transform_indices = @transform_0, window_bounds = array<i64: 32, 2>}, {transform_indices = @transform_1, window_bounds = array<i64: 32, 8>}]} {
    %c0 = arith.constant 0 : index
    %c0_0 = arith.constant 0 : index
    %0 = vector.load %arg1[%c0, %c0_0] : memref<32x2xi32, #tpu.memory_space<vmem>>, vector<32x1xi32>
    %c0_1 = arith.constant 0 : index
    %c1 = arith.constant 1 : index
    %1 = vector.load %arg1[%c0_1, %c1] : memref<32x2xi32, #tpu.memory_space<vmem>>, vector<32x1xi32>
    %2 = tpu.iota {dimensions = array<i32: 1>} : vector<32x8xi32>
    %3 = vector.broadcast %0 : vector<32x1xi32> to vector<32x8xi32>
    %4 = arith.subi %2, %3 : vector<32x8xi32>
    %5 = tpu.bitcast %4 : vector<32x8xi32> -> vector<32x8xi32>
    %6 = tpu.bitcast %1 : vector<32x1xi32> -> vector<32x1xi32>
    %7 = vector.broadcast %6 : vector<32x1xi32> to vector<32x8xi32>
    %8 = arith.cmpi ult, %5, %7 : vector<32x8xi32>
    %9 = arith.extui %8 : vector<32x8xi1> to vector<32x8xi8>
    %c0_2 = arith.constant 0 : index
    %c0_3 = arith.constant 0 : index
    %10 = vector.load %arg2[%c0_2, %c0_3] : memref<32x8xi8, #tpu.memory_space<vmem>>, vector<32x8xi8>
    tpu.vector_store %arg2[%c0_2, %c0_3], %9 {strides = array<i32>} : memref<32x8xi8, #tpu.memory_space<vmem>>, vector<32x8xi8>,
    return
  }
  func.func @transform_0(%arg0: i32) -> (i32, i32) {
    %c0_i32 = arith.constant 0 : i32
    %c0_i32_0 = arith.constant 0 : i32
    return %arg0, %c0_i32 : i32, i32
  }
  func.func @transform_1(%arg0: i32) -> (i32, i32) {
    %c0_i32 = arith.constant 0 : i32
    %c0_i32_0 = arith.constant 0 : i32
    return %arg0, %c0_i32 : i32, i32
  }
}

</mosaic_0001>

<bundles_post_ra>
// kernel: tpu_custom_call.1
= control target key start
LH: loop header
LB: loop body
LE: loop exit
PB: predicated region body
PF: predicated region fallthrough
CT: control target
= control target key end

     0   :  { %v142_v2 = vmov 0   ;;  %s180_s0 = inlined_call_operand.vmem [shape: s32[3,2], index: 0, kind: input, shape index: {}]   ;;  %s181_s1 = inlined_call_operand.hbm [shape: s8[3,8], index: 1, kind: output, shape index: {}]  }
   0x1   :  { %v13_v0 = vld [vmem:[%s180_s0 + $0x10] sm:$0xff]  ;;  %v11_v1 = vld [vmem:[%s180_s0] sm:$0xff]  ;;  %112 = vset.pattern.permute.xlu1 %v142_v2  ;;  %111 = vset.pattern.permute.xlu0 %v142_v2 }
   0x2   :  { %6 = vsyncpa [#allocation3], 0  ;;  %24 = vperm.xlu1 %112, %v13_v0   ;;  %18 = vperm.xlu0 %111, %v11_v1   ;;  %v143_v3 = vmov 1   ;;  %v14_v4 = vld [vmem:[%s180_s0 + $0x18] sm:$0xff]  ;;  %v12_v5 = vld [vmem:[%s180_s0 + $0x8] sm:$0xff]  ;;  %v15_v9 = vlaneseq  ;;  %vm71_vm6 = vcmask 57344  }
   0x3   :  { %113 = vset.pattern.permute.xlu2 %v143_v3 }
   0x4   :  { %34 = vperm.xlu2 %113, %v11_v1   ;;  %v16_v10 = vand.u32 127, %v15_v9 }
   0xa   :  { %27 = vperm.xlu1 %112, %v14_v4   ;;  %21 = vperm.xlu0 %111, %v12_v5  }
   0xc   :  { %37 = vperm.xlu2 %113, %v12_v5  }
  0x12   :  { %115 = vset.pattern.permute.xlu1 %v143_v3  ;;  %114 = vset.pattern.permute.xlu0 %v143_v3 }
  0x13   :  { %43 = vperm.xlu1 %115, %v14_v4   ;;  %40 = vperm.xlu0 %114, %v13_v0  }
  0x5e   :  { %v35_v6 = vpop.permute.xlu2 %34 }
  0x5f   :  { %v99_v20 = vxor.u32 2147483648, %v35_v6 }
  0x66   :  { %v38_v14 = vpop.permute.xlu2 %37 }
  0x67   :  { %v101_v17 = vxor.u32 2147483648, %v38_v14 }
  0x74   :  { %v25_v7 = vpop.permute.xlu1 %24  ;;  %v19_v8 = vpop.permute.xlu0 %18 }
  0x75   :  { %v29_v15 = vsub.s32 %v16_v10, %v19_v8  ;;  %v31_v18 = vsub.s32 %v16_v10, %v25_v7 }
  0x77   :  { %v98_v19 = vxor.u32 2147483648, %v29_v15  ;;  %v102_v22 = vxor.u32 2147483648, %v31_v18 }
  0x79   :  { %vm47_vm1 = vcmp.lt.s32.totalorder %v98_v19, %v99_v20 }
  0x7c   :  { %v28_v11 = vpop.permute.xlu1 %27  ;;  %v22_v12 = vpop.permute.xlu0 %21 }
  0x7d   :  { %v30_v13 = vsub.s32 %v16_v10, %v22_v12  ;;  %v32_v21 = vsub.s32 %v16_v10, %v28_v11 }
  0x7f   :  { %v100_v16 = vxor.u32 2147483648, %v30_v13  ;;  %v104_v25 = vxor.u32 2147483648, %v32_v21 }
  0x81   :  { %vm50_vm0 = vcmp.lt.s32.totalorder %v100_v16, %v101_v17 }
  0x82   :  { %vm57_vm2 = vmpackc.low %vm50_vm0, %vm47_vm1 }
  0x83   :  { %v59_v28 = vsel %vm57_vm2, 16711935, %v142_v2 }
  0x85   :  { %v44_v23 = vpop.permute.xlu1 %43  ;;  %v41_v24 = vpop.permute.xlu0 %40 }
  0x86   :  { %v105_v26 = vxor.u32 2147483648, %v44_v23  ;;  %v103_v27 = vxor.u32 2147483648, %v41_v24 }
  0x88   :  { %vm56_vm3 = vcmp.lt.s32.totalorder %v104_v25, %v105_v26  ;;  %vm53_vm4 = vcmp.lt.s32.totalorder %v102_v22, %v103_v27 }
  0x89   :  { %vm58_vm5 = vmpackc.low %vm56_vm3, %vm53_vm4 }
  0x8a   :  { %v60_v29 = vsel %vm58_vm5, 16711935, %v142_v2 }
  0x8b   :  { %v61_v30 = vpack.c.b8 %v60_v29, %v59_v28 }
  0x8d   :  { %vm62_vm7 = vnez %v61_v30 }
  0x8e   :  { %v63_v31 = vsel %vm62_vm7, 16843009, %v142_v2 }
  0x8f   :  { %v64_v32 = vrot.slane %v63_v31, 1  ;;  %v65_v33 = vrot.slane %v63_v31, 2  ;;  %v66_v34 = vrot.slane %v63_v31, 3  ;;  %72 = vst.msk [vmem:[#allocation2] sm:$0x1] %vm71_vm6, %v63_v31  ;;  %v67_v35 = vrot.slane %v63_v31, 4 }
  0x90   :  { %v68_v36 = vrot.slane %v63_v31, 5  ;;  %v69_v37 = vrot.slane %v63_v31, 6  ;;  %v70_v38 = vrot.slane %v63_v31, 7 }
  0x91   :  { %73 = vst.msk [vmem:[#allocation2 + $0x1] sm:$0x1] %vm71_vm6, %v64_v32 }
  0x92   :  { %74 = vst.msk [vmem:[#allocation2 + $0x2] sm:$0x1] %vm71_vm6, %v65_v33 }
  0x93   :  { %75 = vst.msk [vmem:[#allocation2 + $0x3] sm:$0x1] %vm71_vm6, %v66_v34 }
  0x94   :  { %76 = vst.msk [vmem:[#allocation2 + $0x4] sm:$0x1] %vm71_vm6, %v67_v35 }
  0x95   :  { %77 = vst.msk [vmem:[#allocation2 + $0x5] sm:$0x1] %vm71_vm6, %v68_v36 }
  0x96   :  { %78 = vst.msk [vmem:[#allocation2 + $0x6] sm:$0x1] %vm71_vm6, %v69_v37 }
  0x97   :  { %79 = vst.msk [vmem:[#allocation2 + $0x7] sm:$0x1] %vm71_vm6, %v70_v38 }
  0x98   :  { %83 = vsyncadd [#allocation3], 112  ;;  %s86_s15 = sshll.u32 %s181_s1, 4  ;;  %s144_s16 = smov [#allocation2]   ;;  %s87_s15 = int_to_ptr.hbm [resolvable:$true] %s86_s15 }
  0x99   :  { %s84_s17 = sshll.u32 %s144_s16, 4  ;;  %s145_s18 = smov 16   ;;  %s85_s17 = int_to_ptr.vmem [resolvable:$true] %s84_s17 }
  0x9a   :  { %s146_s19 = smov 1  }
  0x9b   :  { %92 = dma.vmem_to_hbm [thread:$0]  %s85_s17, 16, %s87_s15, [#allocation3], %s145_s18, %s145_s18, %s146_s19  }
  0x9c   :  { %140 = dma.done.wait [#allocation3], 128  }
  0x9d   :  { %141 = vsyncadd [#allocation3], 4294967168 }
  0x9e   :  { %97 = vsyncpa [#allocation3], 1 }

</bundles_post_ra>
